<compile_context>
chip_gen: v7x
topology: tpu7x:2x2x1
jax: 0.10.0
libtpu: 0.0.40
codegen_flags: <defaults>
</compile_context>

<pallas_src>
import numpy as np
import jax
import jax.numpy as jnp
from jax import lax
from jax.experimental import pallas as pl
from jax.experimental.pallas import tpu as pltpu

EPS = 1e-5
# (C_in, C_out, K, pad, stride) for the three conv+BN+ReLU blocks.
CONV_CFG = [(1, 32, 5, 2, 1), (32, 64, 7, 3, 2), (64, 128, 9, 4, 2)]

_VMEM_LIMIT = 32 * 1024 * 1024  # explicit scoped-VMEM limit (safe on v5e/v6e/v7x)
_TM_MAX = 512                   # row-tile: multiple of 8 (conv) and of 128 (head out)


def _round_up(n, m):
    return ((n + m - 1) // m) * m


# -----------------------------------------------------------------------------
# Pallas kernels (the matmul hot path lives here)
# -----------------------------------------------------------------------------
def _conv_bn_relu_kernel(p_ref, w_ref, shift_ref, o_ref):
    """Fused im2col-conv (matmul, BN scale pre-folded into W) + shift + ReLU."""
    acc = jnp.dot(p_ref[...], w_ref[...], preferred_element_type=jnp.float32)
    o_ref[...] = jnp.maximum(acc + shift_ref[...], 0.0).astype(o_ref.dtype)


def _conv_bn_relu_head_kernel(p_ref, w_ref, shift_ref, w4_ref, b4_ref, o_ref):
    """Layer-3 conv+BN+ReLU fused with the final 1x1 conv head.

    Writes the head result lane-dense as a (1, TM) row (rows on lanes), so the
    (M, 128) activation never round-trips through HBM and stores are unmasked.
    """
    acc = jnp.dot(p_ref[...], w_ref[...], preferred_element_type=jnp.float32)
    h = jnp.maximum(acc + shift_ref[...], 0.0)                     # (TM, 128)
    z_t = jnp.dot(w4_ref[...], h.T, preferred_element_type=jnp.float32)  # (1, TM)
    o_ref[...] = (z_t + b4_ref[...]).astype(o_ref.dtype)


def conv_bn_relu(patches_flat, w_mat, shift):
    """patches_flat: (M, KC) with M = B*L_out flattened rows -> (M, C_out)."""
    M, KC = patches_flat.shape
    C_out = w_mat.shape[1]
    M8 = _round_up(M, 8)
    TM = M8 if M8 <= _TM_MAX else _TM_MAX
    M_pad = _round_up(M, TM)
    if M_pad != M:
        patches_flat = jnp.pad(patches_flat, ((0, M_pad - M), (0, 0)))
    out = pl.pallas_call(
        _conv_bn_relu_kernel,
        out_shape=jax.ShapeDtypeStruct((M_pad, C_out), jnp.float32),
        grid=(M_pad // TM,),
        in_specs=[
            pl.BlockSpec((TM, KC), lambda m: (m, 0)),
            pl.BlockSpec((KC, C_out), lambda m: (0, 0)),
            pl.BlockSpec((1, C_out), lambda m: (0, 0)),
        ],
        out_specs=pl.BlockSpec((TM, C_out), lambda m: (m, 0)),
        compiler_params=pltpu.CompilerParams(
            dimension_semantics=("parallel",),
            vmem_limit_bytes=_VMEM_LIMIT),
    )(patches_flat, w_mat, shift)
    return out[:M]


def conv_bn_relu_head(patches_flat, w_mat, shift, w4_row, b4):
    """Layer-3 block fused with the 1x1 head: (M, KC) -> (M,) head logits."""
    M, KC = patches_flat.shape
    C_out = w_mat.shape[1]
    M8 = _round_up(M, 8)
    TM = M8 if M8 <= _TM_MAX else _TM_MAX   # if tiled, TM=512 is a multiple of 128
    M_pad = _round_up(M, TM)
    if M_pad != M:
        patches_flat = jnp.pad(patches_flat, ((0, M_pad - M), (0, 0)))
    out = pl.pallas_call(
        _conv_bn_relu_head_kernel,
        out_shape=jax.ShapeDtypeStruct((1, M_pad), jnp.float32),
        grid=(M_pad // TM,),
        in_specs=[
            pl.BlockSpec((TM, KC), lambda m: (m, 0)),
            pl.BlockSpec((KC, C_out), lambda m: (0, 0)),
            pl.BlockSpec((1, C_out), lambda m: (0, 0)),
            pl.BlockSpec((1, C_out), lambda m: (0, 0)),
            pl.BlockSpec((1, 1), lambda m: (0, 0)),
        ],
        out_specs=pl.BlockSpec((1, TM), lambda m: (0, m)),
        compiler_params=pltpu.CompilerParams(
            dimension_semantics=("parallel",),
            vmem_limit_bytes=_VMEM_LIMIT),
    )(patches_flat, w_mat, shift, w4_row, b4)
    return out[0, :M]


# -----------------------------------------------------------------------------
# Plain-JAX glue
# -----------------------------------------------------------------------------
def im2col_1d(x, K, pad, stride):
    """x: (B, L, C) channels-last -> patches (B, L_out, K*C), index = k*C + c."""
    B, L, C = x.shape
    xp = jnp.pad(x, ((0, 0), (pad, pad), (0, 0)))
    L_out = (L + 2 * pad - K) // stride + 1
    cols = [xp[:, k:k + stride * (L_out - 1) + 1:stride, :] for k in range(K)]
    patches = jnp.stack(cols, axis=2)  # (B, L_out, K, C)
    return patches.reshape(B, L_out, K * C), L_out


def linear_interp_coeffs(L_out, L_in):
    """PyTorch F.interpolate(mode='linear', align_corners=False) as 2-tap gather+lerp."""
    scale = L_in / L_out
    i = np.arange(L_out, dtype=np.float64)
    src = np.maximum((i + 0.5) * scale - 0.5, 0.0)
    i0 = np.minimum(np.floor(src), L_in - 1).astype(np.int32)
    i1 = np.minimum(i0 + 1, L_in - 1).astype(np.int32)
    lam = (src - i0).astype(np.float32)
    return i0, i1, lam


def linear_interp_matrix(L_out, L_in):
    """Dense (L_out, L_in) interpolation matrix -- used only by the pure-JAX reference."""
    M = np.zeros((L_out, L_in), dtype=np.float32)
    i0, i1, lam = linear_interp_coeffs(L_out, L_in)
    for i in range(L_out):
        M[i, i0[i]] += 1.0 - lam[i]
        M[i, i1[i]] += lam[i]
    return M


def init_params(key):
    """Deterministic synthetic parameters (shapes match the PyTorch module)."""
    layers = []
    for (ci, co, K, pad, stride) in CONV_CFG:
        key, k1, k2, k3, k4, k5, k6 = jax.random.split(key, 7)
        W = jax.random.normal(k1, (co, ci, K), jnp.float32) / np.sqrt(ci * K)
        b = 0.1 * jax.random.normal(k2, (co,), jnp.float32)
        gamma = 1.0 + 0.1 * jax.random.normal(k3, (co,), jnp.float32)
        beta = 0.1 * jax.random.normal(k4, (co,), jnp.float32)
        mean = 0.1 * jax.random.normal(k5, (co,), jnp.float32)
        var = jax.random.uniform(k6, (co,), jnp.float32, minval=0.5, maxval=1.5)
        scale_bn = gamma / jnp.sqrt(var + EPS)
        w_mat = jnp.transpose(W, (2, 1, 0)).reshape(K * ci, co)  # row index = k*ci + c
        layers.append(dict(
            W=W, b=b, gamma=gamma, beta=beta, mean=mean, var=var,
            # BN scale folded into the conv weights (per output column):
            w_mat=w_mat * scale_bn[None, :],
            shift=((b - mean) * scale_bn + beta)[None, :],
        ))
    key, k1, k2 = jax.random.split(key, 3)
    W4 = jax.random.normal(k1, (1, 128, 1), jnp.float32) / np.sqrt(128.0)
    b4 = 0.1 * jax.random.normal(k2, (1,), jnp.float32)
    return dict(
        layers=layers, W4=W4, b4=b4,
        w4_row=W4[:, :, 0],          # (1, 128) -- head weights as a lane-dense row
        b4_mat=b4[None, :],          # (1, 1)
    )


def peak_picker_forward(x_ncl, params):
    """x_ncl: (B, 1, L) NCW, returns (B, 1, L) NCW -- same as the PyTorch module."""
    B, _, L = x_ncl.shape
    h = jnp.transpose(x_ncl, (0, 2, 1))                       # -> (B, L, C) channels-last

    # Blocks 1 & 2: im2col (glue) + fused matmul/shift/ReLU over flattened rows.
    for idx in range(2):
        ci, co, K, pad, stride = CONV_CFG[idx]
        p = params["layers"][idx]
        patches, L_out = im2col_1d(h, K, pad, stride)
        out_flat = conv_bn_relu(
            patches.reshape(B * L_out, K * h.shape[-1]), p["w_mat"], p["shift"])
        h = out_flat.reshape(B, L_out, co)

    # Block 3 fused with the 1x1 conv head -> z of shape (B, L3).
    ci, co, K, pad, stride = CONV_CFG[2]
    p = params["layers"][2]
    patches, L3 = im2col_1d(h, K, pad, stride)
    z_flat = conv_bn_relu_head(
        patches.reshape(B * L3, K * h.shape[-1]),
        p["w_mat"], p["shift"], params["w4_row"], params["b4_mat"])
    z = z_flat.reshape(B, L3)

    # O(L) 2-tap linear interpolation (exact half-pixel formula), plain-JAX glue.
    i0, i1, lam = linear_interp_coeffs(L, L3)
    lam = jnp.asarray(lam)[None, :]
    out = (1.0 - lam) * z[:, i0] + lam * z[:, i1]             # (B, L)
    return out[:, None, :]                                    # (B, 1, L) NCW (no transpose needed)


def reference_forward(x_ncl, params):
    """Pure-JAX reference (lax.conv) with identical BN/interp semantics."""
    dn = ("NCH", "OIH", "NCH")
    h = x_ncl
    for (ci, co, K, pad, stride), p in zip(CONV_CFG, params["layers"]):
        h = lax.conv_general_dilated(
            h, p["W"], window_strides=(stride,), padding=[(pad, pad)],
            dimension_numbers=dn, precision=lax.Precision.HIGHEST)
        h = h + p["b"][None, :, None]
        h = (h - p["mean"][None, :, None]) / jnp.sqrt(p["var"][None, :, None] + EPS)
        h = h * p["gamma"][None, :, None] + p["beta"][None, :, None]
        h = jnp.maximum(h, 0.0)
    z = lax.conv_general_dilated(
        h, params["W4"], window_strides=(1,), padding=[(0, 0)],
        dimension_numbers=dn, precision=lax.Precision.HIGHEST)
    z = z + params["b4"][None, :, None]
    M = jnp.asarray(linear_interp_matrix(x_ncl.shape[-1], z.shape[-1]))
    return jnp.einsum("ij,bcj->bci", M, z)


if __name__ == "__main__":
    B, C_in, L = 2, 1, 16
    key = jax.random.PRNGKey(0)
    kx, kp = jax.random.split(key)
    x = jax.random.normal(kx, (B, C_in, L), jnp.float32)
    params = init_params(kp)

    out = jax.jit(peak_picker_forward)(x, params)
    out = jax.block_until_ready(out)
    assert out.shape == (B, 1, L), out.shape

    ref = reference_forward(x, params)
    np.testing.assert_allclose(np.asarray(out), np.asarray(ref), rtol=1e-3, atol=1e-3)
    print("KERNEL_OK")
</pallas_src>

<mosaic_0001>
module attributes {stable_mosaic.version = 11 : i64} {
  func.func @_conv_bn_relu_kernel(%arg0: i32, %arg1: memref<32x5xf32, #tpu.memory_space<vmem>>, %arg2: memref<5x32xf32, #tpu.memory_space<vmem>>, %arg3: memref<1x32xf32, #tpu.memory_space<vmem>>, %arg4: memref<32x32xf32, #tpu.memory_space<vmem>>) attributes {dimension_semantics = [#tpu.dimension_semantics<parallel>], iteration_bounds = array<i64: 1>, scalar_prefetch = 0 : i64, scratch_operands = 0 : i64, tpu.core_type = #tpu.core_type<tc>, window_params = [{transform_indices = @transform_0, window_bounds = array<i64: 32, 5>}, {pipeline_mode = #tpu.pipeline_mode<synchronous>, transform_indices = @transform_1, window_bounds = array<i64: 5, 32>}, {pipeline_mode = #tpu.pipeline_mode<synchronous>, transform_indices = @transform_2, window_bounds = array<i64: 1, 32>}, {transform_indices = @transform_3, window_bounds = array<i64: 32, 32>}]} {
    %c0 = arith.constant 0 : index
    %c0_0 = arith.constant 0 : index
    %0 = vector.load %arg1[%c0, %c0_0] : memref<32x5xf32, #tpu.memory_space<vmem>>, vector<32x5xf32>
    %c0_1 = arith.constant 0 : index
    %c0_2 = arith.constant 0 : index
    %1 = vector.load %arg2[%c0_1, %c0_2] : memref<5x32xf32, #tpu.memory_space<vmem>>, vector<5x32xf32>
    %cst = arith.constant dense<0.000000e+00> : vector<32x32xf32>
    %2 = tpu.matmul %0, %1, %cst {dimension_numbers = #tpu.dot_dimension_numbers<[1], [0], [0], [1], [0, 0, 1, 1], [], []>} : vector<32x5xf32>, vector<5x32xf32>, vector<32x32xf32> -> vector<32x32xf32>
    %c0_3 = arith.constant 0 : index
    %c0_4 = arith.constant 0 : index
    %3 = vector.load %arg3[%c0_3, %c0_4] : memref<1x32xf32, #tpu.memory_space<vmem>>, vector<1x32xf32>
    %4 = vector.broadcast %3 : vector<1x32xf32> to vector<32x32xf32>
    %5 = arith.addf %2, %4 : vector<32x32xf32>
    %cst_5 = arith.constant 0.000000e+00 : f32
    %6 = vector.broadcast %cst_5 : f32 to vector<32x32xf32>
    %7 = arith.maximumf %5, %6 : vector<32x32xf32>
    %c0_6 = arith.constant 0 : index
    %c0_7 = arith.constant 0 : index
    %8 = vector.load %arg4[%c0_6, %c0_7] : memref<32x32xf32, #tpu.memory_space<vmem>>, vector<32x32xf32>
    tpu.vector_store %arg4[%c0_6, %c0_7], %7 {strides = array<i32>} : memref<32x32xf32, #tpu.memory_space<vmem>>, vector<32x32xf32>,
    return
  }
  func.func @transform_0(%arg0: i32) -> (i32, i32) {
    %c0_i32 = arith.constant 0 : i32
    %c0_i32_0 = arith.constant 0 : i32
    return %arg0, %c0_i32 : i32, i32
  }
  func.func @transform_1(%arg0: i32) -> (i32, i32) {
    %c0_i32 = arith.constant 0 : i32
    %c0_i32_0 = arith.constant 0 : i32
    %c0_i32_1 = arith.constant 0 : i32
    return %c0_i32, %c0_i32_0 : i32, i32
  }
  func.func @transform_2(%arg0: i32) -> (i32, i32) {
    %c0_i32 = arith.constant 0 : i32
    %c0_i32_0 = arith.constant 0 : i32
    %c0_i32_1 = arith.constant 0 : i32
    return %c0_i32, %c0_i32_0 : i32, i32
  }
  func.func @transform_3(%arg0: i32) -> (i32, i32) {
    %c0_i32 = arith.constant 0 : i32
    %c0_i32_0 = arith.constant 0 : i32
    return %arg0, %c0_i32 : i32, i32
  }
}

module attributes {stable_mosaic.version = 11 : i64} {
  func.func @_conv_bn_relu_kernel(%arg0: i32, %arg1: memref<16x224xf32, #tpu.memory_space<vmem>>, %arg2: memref<224x64xf32, #tpu.memory_space<vmem>>, %arg3: memref<1x64xf32, #tpu.memory_space<vmem>>, %arg4: memref<16x64xf32, #tpu.memory_space<vmem>>) attributes {dimension_semantics = [#tpu.dimension_semantics<parallel>], iteration_bounds = array<i64: 1>, scalar_prefetch = 0 : i64, scratch_operands = 0 : i64, tpu.core_type = #tpu.core_type<tc>, window_params = [{transform_indices = @transform_0, window_bounds = array<i64: 16, 224>}, {pipeline_mode = #tpu.pipeline_mode<synchronous>, transform_indices = @transform_1, window_bounds = array<i64: 224, 64>}, {pipeline_mode = #tpu.pipeline_mode<synchronous>, transform_indices = @transform_2, window_bounds = array<i64: 1, 64>}, {transform_indices = @transform_3, window_bounds = array<i64: 16, 64>}]} {
    %c0 = arith.constant 0 : index
    %c0_0 = arith.constant 0 : index
    %0 = vector.load %arg1[%c0, %c0_0] : memref<16x224xf32, #tpu.memory_space<vmem>>, vector<16x224xf32>
    %c0_1 = arith.constant 0 : index
    %c0_2 = arith.constant 0 : index
    %1 = vector.load %arg2[%c0_1, %c0_2] : memref<224x64xf32, #tpu.memory_space<vmem>>, vector<224x64xf32>
    %cst = arith.constant dense<0.000000e+00> : vector<16x64xf32>
    %2 = tpu.matmul %0, %1, %cst {dimension_numbers = #tpu.dot_dimension_numbers<[1], [0], [0], [1], [0, 0, 1, 1], [], []>} : vector<16x224xf32>, vector<224x64xf32>, vector<16x64xf32> -> vector<16x64xf32>
    %c0_3 = arith.constant 0 : index
    %c0_4 = arith.constant 0 : index
    %3 = vector.load %arg3[%c0_3, %c0_4] : memref<1x64xf32, #tpu.memory_space<vmem>>, vector<1x64xf32>
    %4 = vector.broadcast %3 : vector<1x64xf32> to vector<16x64xf32>
    %5 = arith.addf %2, %4 : vector<16x64xf32>
    %cst_5 = arith.constant 0.000000e+00 : f32
    %6 = vector.broadcast %cst_5 : f32 to vector<16x64xf32>
    %7 = arith.maximumf %5, %6 : vector<16x64xf32>
    %c0_6 = arith.constant 0 : index
    %c0_7 = arith.constant 0 : index
    %8 = vector.load %arg4[%c0_6, %c0_7] : memref<16x64xf32, #tpu.memory_space<vmem>>, vector<16x64xf32>
    tpu.vector_store %arg4[%c0_6, %c0_7], %7 {strides = array<i32>} : memref<16x64xf32, #tpu.memory_space<vmem>>, vector<16x64xf32>,
    return
  }
  func.func @transform_0(%arg0: i32) -> (i32, i32) {
    %c0_i32 = arith.constant 0 : i32
    %c0_i32_0 = arith.constant 0 : i32
    return %arg0, %c0_i32 : i32, i32
  }
  func.func @transform_1(%arg0: i32) -> (i32, i32) {
    %c0_i32 = arith.constant 0 : i32
    %c0_i32_0 = arith.constant 0 : i32
    %c0_i32_1 = arith.constant 0 : i32
    return %c0_i32, %c0_i32_0 : i32, i32
  }
  func.func @transform_2(%arg0: i32) -> (i32, i32) {
    %c0_i32 = arith.constant 0 : i32
    %c0_i32_0 = arith.constant 0 : i32
    %c0_i32_1 = arith.constant 0 : i32
    return %c0_i32, %c0_i32_0 : i32, i32
  }
  func.func @transform_3(%arg0: i32) -> (i32, i32) {
    %c0_i32 = arith.constant 0 : i32
    %c0_i32_0 = arith.constant 0 : i32
    return %arg0, %c0_i32 : i32, i32
  }
}

module attributes {stable_mosaic.version = 11 : i64} {
  func.func @_conv_bn_relu_head_kernel(%arg0: i32, %arg1: memref<8x576xf32, #tpu.memory_space<vmem>>, %arg2: memref<576x128xf32, #tpu.memory_space<vmem>>, %arg3: memref<1x128xf32, #tpu.memory_space<vmem>>, %arg4: memref<1x128xf32, #tpu.memory_space<vmem>>, %arg5: memref<1x1xf32, #tpu.memory_space<vmem>>, %arg6: memref<1x8xf32, #tpu.memory_space<vmem>>) attributes {dimension_semantics = [#tpu.dimension_semantics<parallel>], iteration_bounds = array<i64: 1>, scalar_prefetch = 0 : i64, scratch_operands = 0 : i64, tpu.core_type = #tpu.core_type<tc>, window_params = [{transform_indices = @transform_0, window_bounds = array<i64: 8, 576>}, {pipeline_mode = #tpu.pipeline_mode<synchronous>, transform_indices = @transform_1, window_bounds = array<i64: 576, 128>}, {pipeline_mode = #tpu.pipeline_mode<synchronous>, transform_indices = @transform_2, window_bounds = array<i64: 1, 128>}, {pipeline_mode = #tpu.pipeline_mode<synchronous>, transform_indices = @transform_3, window_bounds = array<i64: 1, 128>}, {pipeline_mode = #tpu.pipeline_mode<synchronous>, transform_indices = @transform_4, window_bounds = array<i64: 1, 1>}, {transform_indices = @transform_5, window_bounds = array<i64: 1, 8>}]} {
    %c0 = arith.constant 0 : index
    %c0_0 = arith.constant 0 : index
    %0 = vector.load %arg1[%c0, %c0_0] : memref<8x576xf32, #tpu.memory_space<vmem>>, vector<8x576xf32>
    %c0_1 = arith.constant 0 : index
    %c0_2 = arith.constant 0 : index
    %1 = vector.load %arg2[%c0_1, %c0_2] : memref<576x128xf32, #tpu.memory_space<vmem>>, vector<576x128xf32>
    %cst = arith.constant dense<0.000000e+00> : vector<8x128xf32>
    %2 = tpu.matmul %0, %1, %cst {dimension_numbers = #tpu.dot_dimension_numbers<[1], [0], [0], [1], [0, 0, 1, 1], [], []>} : vector<8x576xf32>, vector<576x128xf32>, vector<8x128xf32> -> vector<8x128xf32>
    %c0_3 = arith.constant 0 : index
    %c0_4 = arith.constant 0 : index
    %3 = vector.load %arg3[%c0_3, %c0_4] : memref<1x128xf32, #tpu.memory_space<vmem>>, vector<1x128xf32>
    %4 = vector.broadcast %3 : vector<1x128xf32> to vector<8x128xf32>
    %5 = arith.addf %2, %4 : vector<8x128xf32>
    %cst_5 = arith.constant 0.000000e+00 : f32
    %6 = vector.broadcast %cst_5 : f32 to vector<8x128xf32>
    %7 = arith.maximumf %5, %6 : vector<8x128xf32>
    %c0_6 = arith.constant 0 : index
    %c0_7 = arith.constant 0 : index
    %8 = vector.load %arg4[%c0_6, %c0_7] : memref<1x128xf32, #tpu.memory_space<vmem>>, vector<1x128xf32>
    %9 = tpu.transpose %7, [1, 0] : vector<8x128xf32> -> vector<128x8xf32>
    %cst_8 = arith.constant dense<0.000000e+00> : vector<1x8xf32>
    %10 = tpu.matmul %8, %9, %cst_8 {dimension_numbers = #tpu.dot_dimension_numbers<[1], [0], [0], [1], [0, 0, 1, 1], [], []>} : vector<1x128xf32>, vector<128x8xf32>, vector<1x8xf32> -> vector<1x8xf32>
    %c0_9 = arith.constant 0 : index
    %c0_10 = arith.constant 0 : index
    %11 = vector.load %arg5[%c0_9, %c0_10] : memref<1x1xf32, #tpu.memory_space<vmem>>, vector<1x1xf32>
    %12 = vector.broadcast %11 : vector<1x1xf32> to vector<1x8xf32>
    %13 = arith.addf %10, %12 : vector<1x8xf32>
    %c0_11 = arith.constant 0 : index
    %c0_12 = arith.constant 0 : index
    %14 = vector.load %arg6[%c0_11, %c0_12] : memref<1x8xf32, #tpu.memory_space<vmem>>, vector<1x8xf32>
    tpu.vector_store %arg6[%c0_11, %c0_12], %13 {strides = array<i32>} : memref<1x8xf32, #tpu.memory_space<vmem>>, vector<1x8xf32>,
    return
  }
  func.func @transform_0(%arg0: i32) -> (i32, i32) {
    %c0_i32 = arith.constant 0 : i32
    %c0_i32_0 = arith.constant 0 : i32
    return %arg0, %c0_i32 : i32, i32
  }
  func.func @transform_1(%arg0: i32) -> (i32, i32) {
    %c0_i32 = arith.constant 0 : i32
    %c0_i32_0 = arith.constant 0 : i32
    %c0_i32_1 = arith.constant 0 : i32
    return %c0_i32, %c0_i32_0 : i32, i32
  }
  func.func @transform_2(%arg0: i32) -> (i32, i32) {
    %c0_i32 = arith.constant 0 : i32
    %c0_i32_0 = arith.constant 0 : i32
    %c0_i32_1 = arith.constant 0 : i32
    return %c0_i32, %c0_i32_0 : i32, i32
  }
  func.func @transform_3(%arg0: i32) -> (i32, i32) {
    %c0_i32 = arith.constant 0 : i32
    %c0_i32_0 = arith.constant 0 : i32
    %c0_i32_1 = arith.constant 0 : i32
    return %c0_i32, %c0_i32_0 : i32, i32
  }
  func.func @transform_4(%arg0: i32) -> (i32, i32) {
    %c0_i32 = arith.constant 0 : i32
    %c0_i32_0 = arith.constant 0 : i32
    %c0_i32_1 = arith.constant 0 : i32
    return %c0_i32, %c0_i32_0 : i32, i32
  }
  func.func @transform_5(%arg0: i32) -> (i32, i32) {
    %c0_i32 = arith.constant 0 : i32
    %c0_i32_0 = arith.constant 0 : i32
    return %c0_i32, %arg0 : i32, i32
  }
}

</mosaic_0001>

<bundles_post_ra>
// kernel: peak_picker_forward.4
= control target key start
LH: loop header
LB: loop body
LE: loop exit
PB: predicated region body
PF: predicated region fallthrough
CT: control target
= control target key end

     0   :  { %v218_v0 = vmov 0.0|0.0   ;;  %vm53_vm0 = vcmask 785408   ;;  %vm137_vm1 = vcmask 523264   ;;  %s372_s1 = inlined_call_operand.vmem [shape: f32[224,64], index: 1, kind: input, shape index: {}]   ;;  %s373_s0 = inlined_call_operand.vmem [shape: f32[16,224], index: 0, kind: input, shape index: {}]   ;;  %s374_s2 = inlined_call_operand.vmem [shape: f32[1,64], index: 2, kind: input, shape index: {}]   ;;  %s375_s3 = inlined_call_operand.vmem [shape: f32[16,64], index: 3, kind: output, shape index: {}]  }
   0x1   :  { %147 = vmatprep.subr.bf16.mxu0 %v218_v0  ;;  %189 = vmatprep.subr.bf16.mxu1 %v218_v0  ;;  %v18_v1 = vld [vmem:[%s372_s1] sm:$0xff]  ;;  %v19_v2 = vld [vmem:[%s372_s1 + $0x8] sm:$0xff]  ;;  %v20_v3 = vld [vmem:[%s372_s1 + $0x10] sm:$0xff] }
   0x2   :  { %v148_v4 = vpack.c.bf16 %v19_v2, %v18_v1  ;;  %v21_v5 = vld [vmem:[%s372_s1 + $0x18] sm:$0xff]  ;;  %v22_v7 = vld [vmem:[%s372_s1 + $0x20] sm:$0xff]  ;;  %v23_v8 = vld [vmem:[%s372_s1 + $0x28] sm:$0xff] }
   0x3   :  { %v151_v6 = vpack.c.bf16 %v21_v5, %v20_v3  ;;  %v154_v9 = vpack.c.bf16 %v23_v8, %v22_v7  ;;  %v24_v10 = vld [vmem:[%s372_s1 + $0x30] sm:$0xff]  ;;  %v25_v11 = vld [vmem:[%s372_s1 + $0x38] sm:$0xff]  ;;  %v15_v12 = vld [vmem:[%s373_s0 + $0x8] sm:$0xff] }
   0x4   :  { %149 = vmatpush1.bf16.msra.mxu0 %v148_v4  ;;  %203 = vmatpush1.bf16.msra.mxu1 %v148_v4  ;;  %v17_v13 = vld [vmem:[%s373_s0 + $0x18] sm:$0xff]  ;;  %v157_v14 = vpack.c.bf16 %v25_v11, %v24_v10  ;;  %v26_v15 = vld [vmem:[%s372_s1 + $0x40] sm:$0xff]  ;;  %v27_v16 = vld [vmem:[%s372_s1 + $0x48] sm:$0xff] }
   0x5   :  { %150 = vmatprep.subr.bf16.mxu0 %v218_v0  ;;  %190 = vmatprep.subr.bf16.mxu1 %v218_v0  ;;  %v160_v17 = vpack.c.bf16 %v27_v16, %v26_v15  ;;  %v28_v18 = vld [vmem:[%s372_s1 + $0x50] sm:$0xff]  ;;  %v29_v19 = vld [vmem:[%s372_s1 + $0x58] sm:$0xff]  ;;  %v30_v21 = vld [vmem:[%s372_s1 + $0x60] sm:$0xff] }
   0x6   :  { %145 = vmatprep.mubr.msk.f32.mxu0 %vm53_vm0, %v15_v12  ;;  %146 = vmatprep.mubr.msk.f32.mxu1 %vm53_vm0, %v17_v13  ;;  %v163_v20 = vpack.c.bf16 %v29_v19, %v28_v18  ;;  %v31_v22 = vld [vmem:[%s372_s1 + $0x68] sm:$0xff]  ;;  %v32_v24 = vld [vmem:[%s372_s1 + $0x70] sm:$0xff]  ;;  %v33_v25 = vld [vmem:[%s372_s1 + $0x78] sm:$0xff] }
   0x7   :  { %v166_v23 = vpack.c.bf16 %v31_v22, %v30_v21  ;;  %v169_v26 = vpack.c.bf16 %v33_v25, %v32_v24  ;;  %v34_v27 = vld [vmem:[%s372_s1 + $0x80] sm:$0xff]  ;;  %v35_v28 = vld [vmem:[%s372_s1 + $0x88] sm:$0xff]  ;;  %v36_v30 = vld [vmem:[%s372_s1 + $0x90] sm:$0xff] }
   0x8   :  { %152 = vmatpush1.bf16.msra.mxu0 %v151_v6  ;;  %204 = vmatpush1.bf16.msra.mxu1 %v151_v6  ;;  %v172_v29 = vpack.c.bf16 %v35_v28, %v34_v27  ;;  %v37_v31 = vld [vmem:[%s372_s1 + $0x98] sm:$0xff]  ;;  %v38_v33 = vld [vmem:[%s372_s1 + $0xa0] sm:$0xff]  ;;  %v39_v34 = vld [vmem:[%s372_s1 + $0xa8] sm:$0xff] }
   0x9   :  { %153 = vmatprep.subr.bf16.mxu0 %v218_v0  ;;  %191 = vmatprep.subr.bf16.mxu1 %v218_v0  ;;  %v175_v32 = vpack.c.bf16 %v37_v31, %v36_v30  ;;  %v178_v35 = vpack.c.bf16 %v39_v34, %v38_v33  ;;  %v40_v36 = vld [vmem:[%s372_s1 + $0xb0] sm:$0xff]  ;;  %v41_v37 = vld [vmem:[%s372_s1 + $0xb8] sm:$0xff]  ;;  %v42_v39 = vld [vmem:[%s372_s1 + $0xc0] sm:$0xff] }
   0xa   :  { %v181_v38 = vpack.c.bf16 %v41_v37, %v40_v36  ;;  %v43_v40 = vld [vmem:[%s372_s1 + $0xc8] sm:$0xff]  ;;  %v44_v42 = vld [vmem:[%s372_s1 + $0xd0] sm:$0xff]  ;;  %v45_v43 = vld [vmem:[%s372_s1 + $0xd8] sm:$0xff] }
   0xb   :  { %v184_v41 = vpack.c.bf16 %v43_v40, %v42_v39  ;;  %v187_v44 = vpack.c.bf16 %v45_v43, %v44_v42  ;;  %v14_v45 = vld [vmem:[%s373_s0] sm:$0xff]  ;;  %v16_v46 = vld [vmem:[%s373_s0 + $0x10] sm:$0xff] }
   0xc   :  { %155 = vmatpush1.bf16.msra.mxu0 %v154_v9  ;;  %205 = vmatpush1.bf16.msra.mxu1 %v154_v9  ;;  %v144_v47 = vld [vmem:[%s374_s2] ss:$0 sm:$0xff] }
   0xd   :  { %156 = vmatprep.subr.bf16.mxu0 %v218_v0  ;;  %192 = vmatprep.subr.bf16.mxu1 %v218_v0 }
  0x10   :  { %158 = vmatpush1.bf16.msra.mxu0 %v157_v14  ;;  %206 = vmatpush1.bf16.msra.mxu1 %v157_v14 }
  0x11   :  { %159 = vmatprep.subr.bf16.mxu0 %v218_v0  ;;  %193 = vmatprep.subr.bf16.mxu1 %v218_v0 }
  0x14   :  { %161 = vmatpush1.bf16.msra.mxu0 %v160_v17  ;;  %207 = vmatpush1.bf16.msra.mxu1 %v160_v17 }
  0x15   :  { %162 = vmatprep.subr.bf16.mxu0 %v218_v0  ;;  %194 = vmatprep.subr.bf16.mxu1 %v218_v0 }
  0x18   :  { %164 = vmatpush1.bf16.msra.mxu0 %v163_v20  ;;  %208 = vmatpush1.bf16.msra.mxu1 %v163_v20 }
  0x19   :  { %165 = vmatprep.subr.bf16.mxu0 %v218_v0  ;;  %195 = vmatprep.subr.bf16.mxu1 %v218_v0 }
  0x1c   :  { %167 = vmatpush1.bf16.msra.mxu0 %v166_v23  ;;  %209 = vmatpush1.bf16.msra.mxu1 %v166_v23 }
  0x1d   :  { %168 = vmatprep.subr.bf16.mxu0 %v218_v0  ;;  %196 = vmatprep.subr.bf16.mxu1 %v218_v0 }
  0x20   :  { %170 = vmatpush1.bf16.msra.mxu0 %v169_v26  ;;  %210 = vmatpush1.bf16.msra.mxu1 %v169_v26 }
  0x21   :  { %171 = vmatprep.subr.bf16.mxu0 %v218_v0  ;;  %197 = vmatprep.subr.bf16.mxu1 %v218_v0 }
  0x24   :  { %173 = vmatpush1.bf16.msra.mxu0 %v172_v29  ;;  %211 = vmatpush1.bf16.msra.mxu1 %v172_v29 }
  0x25   :  { %174 = vmatprep.subr.bf16.mxu0 %v218_v0  ;;  %198 = vmatprep.subr.bf16.mxu1 %v218_v0 }
  0x28   :  { %176 = vmatpush1.bf16.msra.mxu0 %v175_v32  ;;  %212 = vmatpush1.bf16.msra.mxu1 %v175_v32 }
  0x29   :  { %177 = vmatprep.subr.bf16.mxu0 %v218_v0  ;;  %199 = vmatprep.subr.bf16.mxu1 %v218_v0 }
  0x2c   :  { %179 = vmatpush1.bf16.msra.mxu0 %v178_v35  ;;  %213 = vmatpush1.bf16.msra.mxu1 %v178_v35 }
  0x2d   :  { %180 = vmatprep.subr.bf16.mxu0 %v218_v0  ;;  %200 = vmatprep.subr.bf16.mxu1 %v218_v0 }
  0x30   :  { %182 = vmatpush1.bf16.msra.mxu0 %v181_v38  ;;  %214 = vmatpush1.bf16.msra.mxu1 %v181_v38 }
  0x31   :  { %183 = vmatprep.subr.bf16.mxu0 %v218_v0  ;;  %201 = vmatprep.subr.bf16.mxu1 %v218_v0 }
  0x34   :  { %185 = vmatpush1.bf16.msra.mxu0 %v184_v41  ;;  %215 = vmatpush1.bf16.msra.mxu1 %v184_v41 }
  0x35   :  { %186 = vmatprep.subr.bf16.mxu0 %v218_v0  ;;  %202 = vmatprep.subr.bf16.mxu1 %v218_v0 }
  0x38   :  { %188 = vmatpush1.bf16.msra.mxu0 %v187_v44  ;;  %216 = vmatpush1.bf16.msra.mxu1 %v187_v44 }
  0x3b   :  { %125 = vmatmul.mubr.f32.vlgmr.msra.gmra.mrb[0].mxu0 %v14_v45  ;;  %130 = vmatmul.mubr.f32.vlgmr.msra.gmra.mrb[0].mxu1 %v16_v46 }
 0x10e   :  { %v126_v48 = vpop.f32.mrb[0].mxu0  ;;  %v131_v49 = vpop.f32.mrb[0].mxu1 }
 0x10f   :  { %v127_v50 = vadd.f32 %v144_v47, %v126_v48  ;;  %v132_v51 = vadd.f32 %v144_v47, %v131_v49  ;;  %v128_v52 = vpop.f32.mrb[1].mxu0  ;;  %v133_v53 = vpop.f32.mrb[1].mxu1 }
 0x111   :  { %v135_v54 = vmax.f32 %v127_v50, 0.0  ;;  %v136_v55 = vmax.f32 %v132_v51, 0.0 }
 0x113   :  { %138 = vst.msk [vmem:[%s375_s3] sm:$0xff] %vm137_vm1, %v135_v54  ;;  %139 = vst.msk [vmem:[%s375_s3 + $0x8] sm:$0xff] %vm137_vm1, %v136_v55 }

// kernel: peak_picker_forward.3
= control target key start
LH: loop header
LB: loop body
LE: loop exit
PB: predicated region body
PF: predicated region fallthrough
CT: control target
= control target key end

     0   :  { %vm39_vm0 = vcmask 1044480   ;;  %vm26_vm1 = vcmask 39936   ;;  %vm132_vm2 = vcmask 261120   ;;  %s212_s1 = inlined_call_operand.vmem [shape: f32[5,32], index: 1, kind: input, shape index: {}]   ;;  %s213_s0 = inlined_call_operand.vmem [shape: f32[32,5], index: 0, kind: input, shape index: {}]   ;;  %s214_s2 = inlined_call_operand.vmem [shape: f32[1,32], index: 2, kind: input, shape index: {}]   ;;  %s215_s3 = inlined_call_operand.vmem [shape: f32[32,32], index: 3, kind: output, shape index: {}]  }
   0x1   :  { %v18_v0 = vld [vmem:[%s212_s1] sm:$0x1f]  ;;  %v16_v2 = vld [vmem:[%s213_s0 + $0x10] sm:$0xff]  ;;  %v15_v3 = vld [vmem:[%s213_s0 + $0x8] sm:$0xff] }
   0x2   :  { %v14_v1 = vld [vmem:[%s213_s0] sm:$0xff]  ;;  %152 = vmatprep.subr.msk.mxu0 %vm39_vm0, %v18_v0  ;;  %160 = vmatprep.subr.msk.mxu1 %vm39_vm0, %v18_v0  ;;  %v17_v4 = vld [vmem:[%s213_s0 + $0x18] sm:$0xff] }
   0x3   :  { %153 = vmatpush3.msk.msra.mxu0 %vm39_vm0, %v18_v0  ;;  %161 = vmatpush3.msk.msra.mxu1 %vm39_vm0, %v18_v0  ;;  %v141_v5 = vld [vmem:[%s214_s2] ss:$0 sm:$0xff] }
   0x4   :  { %154 = vmatprep.mubr.msk.f32.mxu0 %vm26_vm1, %v14_v1  ;;  %157 = vmatprep.mubr.msk.f32.mxu1 %vm26_vm1, %v16_v2 }
   0x5   :  { %155 = vmatmul.mubr.msk.f32.vlgmr.msra.gmra.mrb[0].mxu0 %vm26_vm1, %v15_v3  ;;  %158 = vmatmul.mubr.msk.f32.vlgmr.msra.gmra.mrb[0].mxu1 %vm26_vm1, %v17_v4 }
  0xd8   :  { %v156_v6 = vpop.f32.mrb[0].mxu0  ;;  %v159_v7 = vpop.f32.mrb[0].mxu1 }
  0xd9   :  { %v115_v8 = vadd.f32 %v156_v6, %v141_v5  ;;  %v125_v9 = vadd.f32 %v159_v7, %v141_v5  ;;  %v109_v10 = vpop.f32.mrb[1].mxu0  ;;  %v119_v11 = vpop.f32.mrb[1].mxu1 }
  0xda   :  { %v110_v12 = vadd.f32 %v141_v5, %v109_v10  ;;  %v120_v13 = vadd.f32 %v141_v5, %v119_v11 }
  0xdb   :  { %v129_v14 = vmax.f32 %v115_v8, 0.0  ;;  %v131_v15 = vmax.f32 %v125_v9, 0.0 }
  0xdc   :  { %v128_v16 = vmax.f32 %v110_v12, 0.0  ;;  %v130_v17 = vmax.f32 %v120_v13, 0.0 }
  0xdd   :  { %134 = vst.msk [vmem:[%s215_s3 + $0x8] sm:$0xff] %vm132_vm2, %v129_v14  ;;  %136 = vst.msk [vmem:[%s215_s3 + $0x18] sm:$0xff] %vm132_vm2, %v131_v15 }
  0xde   :  { %133 = vst.msk [vmem:[%s215_s3] sm:$0xff] %vm132_vm2, %v128_v16  ;;  %135 = vst.msk [vmem:[%s215_s3 + $0x10] sm:$0xff] %vm132_vm2, %v130_v17 }

// kernel: squeeze.1
= control target key start
LH: loop header
LB: loop body
LE: loop exit
PB: predicated region body
PF: predicated region fallthrough
CT: control target
= control target key end

     0   :  { %vm7_vm0 = vcmask 31744   ;;  %s39_s0 = inlined_call_operand.vmem [shape: f32[8], index: 0, kind: input, shape index: {}]   ;;  %s40_s1 = inlined_call_operand.vmem [shape: f32[2,4], index: 1, kind: output, shape index: {}]  }
   0x1   :  { %v4_v0 = vld [vmem:[%s39_s0] sm:$0x1]  ;;  %s22_s0 = smov 124  }
   0x2   :  { %5 = vst [vmem:[#allocation1] sm:$0x1] %v4_v0 }
   0x9   :  { %v9_v1 = vld [vmem:[#allocation1] sm:$0x1]  }
   0xa   :  { %v6_v2 = vld [vmem:[#allocation1] sm:$0x1]   ;;  %10 = vrot.lane.b32.xlu0 %v9_v1, %s22_s0 }
   0xb   :  { %8 = vst.msk [vmem:[#allocation0] sm:$0x1] %vm7_vm0, %v6_v2  }
  0x7c   :  { %v11_v3 = vpop.permute.xlu0 %10  }
  0x7d   :  { %14 = vst.msk [vmem:[#allocation0 + $0x1] sm:$0x1] %vm7_vm0, %v11_v3  }
  0x84   :  { %v18_v4 = vld [vmem:[#allocation0] sm:$0x3] }
  0x85   :  { %20 = vst [vmem:[%s40_s1] sm:$0x3] %v18_v4 }

// kernel: peak_picker_forward.5
= control target key start
LH: loop header
LB: loop body
LE: loop exit
PB: predicated region body
PF: predicated region fallthrough
CT: control target
= control target key end

     0   :  { %vm598_vm0 = vmmov 0   ;;  %vm106_vm1 = vcmask 523264   ;;  %vm402_vm2 = vcmask 57344   ;;  %s873_s1 = inlined_call_operand.vmem [shape: f32[576,128], index: 1, kind: input, shape index: {}]   ;;  %s874_s0 = inlined_call_operand.vmem [shape: f32[8,576], index: 0, kind: input, shape index: {}]   ;;  %s875_s4 = inlined_call_operand.<no memory space> [shape: f32[1,1], index: 4, kind: input, shape index: {}]   ;;  %s876_s2 = inlined_call_operand.vmem [shape: f32[1,128], index: 2, kind: input, shape index: {}]   ;;  %s877_s3 = inlined_call_operand.vmem [shape: f32[1,128], index: 3, kind: input, shape index: {}]   ;;  %s878_s5 = inlined_call_operand.vmem [shape: f32[1,8], index: 5, kind: output, shape index: {}]  }
   0x1   :  { %v43_v0 = vld [vmem:[%s873_s1 + $0x80] sm:$0xff]  ;;  %v44_v1 = vld [vmem:[%s873_s1 + $0x88] sm:$0xff]  ;;  %v45_v11 = vld [vmem:[%s873_s1 + $0x90] sm:$0xff] }
   0x2   :  { %v27_v2 = vld [vmem:[%s873_s1] sm:$0xff]  ;;  %v515_v3 = vpack.c.bf16 %v44_v1, %v43_v0  ;;  %v28_v4 = vld [vmem:[%s873_s1 + $0x8] sm:$0xff]  ;;  %v46_v13 = vld [vmem:[%s873_s1 + $0x98] sm:$0xff] }
   0x3   :  { %v75_v5 = vld [vmem:[%s873_s1 + $0x180] sm:$0xff]  ;;  %v76_v6 = vld [vmem:[%s873_s1 + $0x188] sm:$0xff]  ;;  %v517_v7 = vpack.c.bf16 %v28_v4, %v27_v2  ;;  %v29_v14 = vld [vmem:[%s873_s1 + $0x10] sm:$0xff]  ;;  %v519_v16 = vpack.c.bf16 %v46_v13, %v45_v11 }
   0x4   :  { %v547_v8 = vpack.c.bf16 %v76_v6, %v75_v5  ;;  %v59_v9 = vld [vmem:[%s873_s1 + $0x100] sm:$0xff]  ;;  %v60_v10 = vld [vmem:[%s873_s1 + $0x108] sm:$0xff]  ;;  %516 = vmatprep.subr.bf16.mxu0 %v515_v3  ;;  %v30_v15 = vld [vmem:[%s873_s1 + $0x18] sm:$0xff] }
   0x5   :  { %v549_v12 = vpack.c.bf16 %v60_v10, %v59_v9  ;;  %518 = vmatpush3.bf16.msra.mxu0 %v517_v7  ;;  %v521_v17 = vpack.c.bf16 %v30_v15, %v29_v14  ;;  %v77_v18 = vld [vmem:[%s873_s1 + $0x190] sm:$0xff]  ;;  %v78_v19 = vld [vmem:[%s873_s1 + $0x198] sm:$0xff]  ;;  %v47_v23 = vld [vmem:[%s873_s1 + $0xa0] sm:$0xff] }
   0x6   :  { %548 = vmatprep.subr.bf16.mxu1 %v547_v8  ;;  %v61_v20 = vld [vmem:[%s873_s1 + $0x110] sm:$0xff]  ;;  %v551_v21 = vpack.c.bf16 %v78_v19, %v77_v18  ;;  %v62_v22 = vld [vmem:[%s873_s1 + $0x118] sm:$0xff]  ;;  %v48_v24 = vld [vmem:[%s873_s1 + $0xa8] sm:$0xff]  ;;  %520 = vmatprep.subr.bf16.mxu0 %v519_v16 }
   0x7   :  { %550 = vmatpush3.bf16.msra.mxu1 %v549_v12  ;;  %v553_v25 = vpack.c.bf16 %v62_v22, %v61_v20  ;;  %v523_v26 = vpack.c.bf16 %v48_v24, %v47_v23  ;;  %v31_v27 = vld [vmem:[%s873_s1 + $0x20] sm:$0xff]  ;;  %v32_v28 = vld [vmem:[%s873_s1 + $0x28] sm:$0xff]  ;;  %v49_v35 = vld [vmem:[%s873_s1 + $0xb0] sm:$0xff] }
   0x8   :  { %v79_v29 = vld [vmem:[%s873_s1 + $0x1a0] sm:$0xff]  ;;  %552 = vmatprep.subr.bf16.mxu1 %v551_v21  ;;  %v80_v30 = vld [vmem:[%s873_s1 + $0x1a8] sm:$0xff]  ;;  %v525_v33 = vpack.c.bf16 %v32_v28, %v31_v27  ;;  %v50_v36 = vld [vmem:[%s873_s1 + $0xb8] sm:$0xff] }
   0x9   :  { %v63_v31 = vld [vmem:[%s873_s1 + $0x120] sm:$0xff]  ;;  %v64_v32 = vld [vmem:[%s873_s1 + $0x128] sm:$0xff]  ;;  %522 = vmatpush3.bf16.msra.mxu0 %v521_v17  ;;  %v555_v34 = vpack.c.bf16 %v80_v30, %v79_v29  ;;  %v33_v37 = vld [vmem:[%s873_s1 + $0x30] sm:$0xff]  ;;  %v527_v39 = vpack.c.bf16 %v50_v36, %v49_v35 }
   0xa   :  { %524 = vmatprep.subr.bf16.mxu0 %v523_v26  ;;  %v557_v38 = vpack.c.bf16 %v64_v32, %v63_v31  ;;  %v34_v40 = vld [vmem:[%s873_s1 + $0x38] sm:$0xff]  ;;  %v81_v41 = vld [vmem:[%s873_s1 + $0x1b0] sm:$0xff]  ;;  %v51_v46 = vld [vmem:[%s873_s1 + $0xc0] sm:$0xff] }
   0xb   :  { %554 = vmatpush3.bf16.msra.mxu1 %v553_v25  ;;  %v82_v42 = vld [vmem:[%s873_s1 + $0x1b8] sm:$0xff]  ;;  %v65_v44 = vld [vmem:[%s873_s1 + $0x130] sm:$0xff]  ;;  %v52_v47 = vld [vmem:[%s873_s1 + $0xc8] sm:$0xff]  ;;  %v529_v48 = vpack.c.bf16 %v34_v40, %v33_v37 }
   0xc   :  { %556 = vmatprep.subr.bf16.mxu1 %v555_v34  ;;  %v559_v43 = vpack.c.bf16 %v82_v42, %v81_v41  ;;  %v66_v45 = vld [vmem:[%s873_s1 + $0x138] sm:$0xff]  ;;  %v83_v49 = vld [vmem:[%s873_s1 + $0x1c0] sm:$0xff]  ;;  %v84_v50 = vld [vmem:[%s873_s1 + $0x1c8] sm:$0xff]  ;;  %v531_v52 = vpack.c.bf16 %v52_v47, %v51_v46  ;;  %v597_v42 = vmov 0.0  }
   0xd   :  { %526 = vmatpush3.bf16.msra.mxu0 %v525_v33  ;;  %v561_v51 = vpack.c.bf16 %v66_v45, %v65_v44  ;;  %v35_v53 = vld [vmem:[%s873_s1 + $0x40] sm:$0xff]  ;;  %v36_v54 = vld [vmem:[%s873_s1 + $0x48] sm:$0xff]  ;;  %v563_v56 = vpack.c.bf16 %v84_v50, %v83_v49  ;;  %v53_v58 = vld [vmem:[%s873_s1 + $0xd0] sm:$0xff] }
   0xe   :  { %528 = vmatprep.subr.bf16.mxu0 %v527_v39  ;;  %v67_v55 = vld [vmem:[%s873_s1 + $0x140] sm:$0xff]  ;;  %v68_v57 = vld [vmem:[%s873_s1 + $0x148] sm:$0xff]  ;;  %v54_v59 = vld [vmem:[%s873_s1 + $0xd8] sm:$0xff]  ;;  %v533_v62 = vpack.c.bf16 %v36_v54, %v35_v53 }
   0xf   :  { %558 = vmatpush3.bf16.msra.mxu1 %v557_v38  ;;  %v85_v60 = vld [vmem:[%s873_s1 + $0x1d0] sm:$0xff]  ;;  %v86_v61 = vld [vmem:[%s873_s1 + $0x1d8] sm:$0xff]  ;;  %v565_v63 = vpack.c.bf16 %v68_v57, %v67_v55  ;;  %v535_v0 = vpack.c.bf16 %v54_v59, %v53_v58  ;;  %v55_v6 = vld [vmem:[%s873_s1 + $0xe0] sm:$0xff]  ;;  %v596_v38 = vmov 0.0|0.0  }
  0x10   :  { %560 = vmatprep.subr.bf16.mxu1 %v559_v43  ;;  %v37_v1 = vld [vmem:[%s873_s1 + $0x50] sm:$0xff]  ;;  %v38_v2 = vld [vmem:[%s873_s1 + $0x58] sm:$0xff]  ;;  %v567_v4 = vpack.c.bf16 %v86_v61, %v85_v60  ;;  %v56_v7 = vld [vmem:[%s873_s1 + $0xe8] sm:$0xff] }
  0x11   :  { %530 = vmatpush3.bf16.msra.mxu0 %v529_v48  ;;  %v69_v3 = vld [vmem:[%s873_s1 + $0x150] sm:$0xff]  ;;  %v70_v5 = vld [vmem:[%s873_s1 + $0x158] sm:$0xff]  ;;  %v87_v8 = vld [vmem:[%s873_s1 + $0x1e0] sm:$0xff]  ;;  %v537_v10 = vpack.c.bf16 %v38_v2, %v37_v1  ;;  %v539_v14 = vpack.c.bf16 %v56_v7, %v55_v6 }
  0x12   :  { %532 = vmatprep.subr.bf16.mxu0 %v531_v52  ;;  %v88_v9 = vld [vmem:[%s873_s1 + $0x1e8] sm:$0xff]  ;;  %v39_v11 = vld [vmem:[%s873_s1 + $0x60] sm:$0xff]  ;;  %v569_v13 = vpack.c.bf16 %v70_v5, %v69_v3  ;;  %v57_v19 = vld [vmem:[%s873_s1 + $0xf0] sm:$0xff]  ;;  %v10_v52 = vstv %s875_s4 }
  0x13   :  { %562 = vmatpush3.bf16.msra.mxu1 %v561_v51  ;;  %v23_v12 = vld [vmem:[%s874_s0 + $0x8] sm:$0xff]  ;;  %v71_v16 = vld [vmem:[%s873_s1 + $0x160] sm:$0xff]  ;;  %v571_v18 = vpack.c.bf16 %v88_v9, %v87_v8  ;;  %v58_v20 = vld [vmem:[%s873_s1 + $0xf8] sm:$0xff]  ;;  %v599_v51 = vmov 0   ;;  %11 = vst [vmem:[#allocation2] sm:$0x1] %v10_v52 }
  0x14   :  { %564 = vmatprep.subr.bf16.mxu1 %v563_v56  ;;  %v40_v15 = vld [vmem:[%s873_s1 + $0x68] sm:$0xff]  ;;  %174 = vmatprep.mubr.f32.mxu0 %v23_v12  ;;  %v25_v21 = vld [vmem:[%s874_s0 + $0x18] sm:$0xff]  ;;  %v89_v22 = vld [vmem:[%s873_s1 + $0x1f0] sm:$0xff]  ;;  %v543_v26 = vpack.c.bf16 %v58_v20, %v57_v19 }
  0x15   :  { %534 = vmatpush3.bf16.msra.mxu0 %v533_v62  ;;  %v72_v17 = vld [vmem:[%s873_s1 + $0x168] sm:$0xff]  ;;  %v90_v23 = vld [vmem:[%s873_s1 + $0x1f8] sm:$0xff]  ;;  %244 = vmatprep.mubr.f32.mxu1 %v25_v21  ;;  %v541_v24 = vpack.c.bf16 %v40_v15, %v39_v11  ;;  %v41_v27 = vld [vmem:[%s873_s1 + $0x70] sm:$0xff] }
  0x16   :  { %536 = vmatprep.subr.bf16.mxu0 %v535_v0  ;;  %v573_v25 = vpack.c.bf16 %v72_v17, %v71_v16  ;;  %v42_v28 = vld [vmem:[%s873_s1 + $0x78] sm:$0xff]  ;;  %v575_v29 = vpack.c.bf16 %v90_v23, %v89_v22  ;;  %v73_v30 = vld [vmem:[%s873_s1 + $0x170] sm:$0xff]  ;;  %v91_v34 = vld [vmem:[%s873_s1 + $0x200] sm:$0xff]  ;;  %595 = vset.pattern.permute.xlu0 %v599_v51 }
  0x17   :  { %566 = vmatpush3.bf16.msra.mxu1 %v565_v63  ;;  %v74_v31 = vld [vmem:[%s873_s1 + $0x178] sm:$0xff]  ;;  %v545_v32 = vpack.c.bf16 %v42_v28, %v41_v27  ;;  %v92_v35 = vld [vmem:[%s873_s1 + $0x208] sm:$0xff]  ;;  %v22_v36 = vld [vmem:[%s874_s0] sm:$0xff] }
  0x18   :  { %568 = vmatprep.subr.bf16.mxu1 %v567_v4  ;;  %v577_v33 = vpack.c.bf16 %v74_v31, %v73_v30  ;;  %v580_v37 = vpack.c.bf16 %v92_v35, %v91_v34  ;;  %v24_v39 = vld [vmem:[%s874_s0 + $0x10] sm:$0xff]  ;;  %v94_v41 = vld [vmem:[%s873_s1 + $0x218] sm:$0xff]  ;;  %v95_v44 = vld [vmem:[%s873_s1 + $0x220] sm:$0xff]  ;;  %v328_v4 = vlaneseq }
  0x19   :  { %538 = vmatpush3.bf16.msra.mxu0 %v537_v10  ;;  %v93_v40 = vld [vmem:[%s873_s1 + $0x210] sm:$0xff]  ;;  %v96_v45 = vld [vmem:[%s873_s1 + $0x228] sm:$0xff]  ;;  %v98_v48 = vld [vmem:[%s873_s1 + $0x238] sm:$0xff] }
  0x1a   :  { %540 = vmatprep.subr.bf16.mxu0 %v539_v14  ;;  %v583_v43 = vpack.c.bf16 %v94_v41, %v93_v40  ;;  %v586_v46 = vpack.c.bf16 %v96_v45, %v95_v44  ;;  %v97_v47 = vld [vmem:[%s873_s1 + $0x230] sm:$0xff]  ;;  %v26_v50 = vld [vmem:[%s874_s0 + $0x20] sm:$0xff]  ;;  %v329_v5 = vshrl.u32 %v328_v4, 7 }
  0x1b   :  { %570 = vmatpush3.bf16.msra.mxu1 %v569_v13  ;;  %v589_v49 = vpack.c.bf16 %v98_v48, %v97_v47  ;;  %v322_v53 = vld [vmem:[#allocation2] sm:$0x1] }
  0x1c   :  { %572 = vmatprep.subr.bf16.mxu1 %v571_v18  ;;  %325 = vperm.xlu0 %595, %v322_v53   ;;  %v408_v55 = vld [vmem:[%s876_s2] ss:$0 sm:$0xff]  ;;  %v330_v6 = vsub.s32 0, %v329_v5 }
  0x1d   :  { %542 = vmatpush3.bf16.msra.mxu0 %v541_v24  ;;  %v321_v3 = vld [vmem:[%s877_s3] sm:$0x1] }
  0x1e   :  { %544 = vmatprep.subr.bf16.mxu0 %v543_v26 }
  0x1f   :  { %574 = vmatpush3.bf16.msra.mxu1 %v573_v25 }
  0x20   :  { %576 = vmatprep.subr.bf16.mxu1 %v575_v29 }
  0x21   :  { %546 = vmatpush3.bf16.msra.mxu0 %v545_v32 }
  0x22   :  { %579 = vmatprep.subr.bf16.mxu0 %v596_v38 }
  0x23   :  { %578 = vmatpush3.bf16.msra.mxu1 %v577_v33 }
  0x24   :  { %510 = vmatprep.subr.mxu1 %v597_v42  ;;  %175 = vmatmul.mubr.f32.vlgmr.msra.gmra.mrb[0].mxu0 %v22_v36 }
  0x25   :  { %581 = vmatpush3.bf16.msra.mxu0 %v580_v37  ;;  %507 = vmatprep.mubr.msk.f32.mxu0 %vm598_vm0, %v597_v42 }
  0x26   :  { %245 = vmatmul.mubr.f32.vlgmr.msra.gmra.mrb[0].mxu1 %v24_v39  ;;  %582 = vmatprep.subr.bf16.mxu0 %v596_v38 }
  0x27   :  { %512 = vmatprep.mubr.msk.f32.mxu1 %vm598_vm0, %v597_v42 }
  0x29   :  { %584 = vmatpush3.bf16.msra.mxu0 %v583_v43 }
  0x2a   :  { %585 = vmatprep.subr.bf16.mxu0 %v596_v38 }
  0x2d   :  { %587 = vmatpush3.bf16.msra.mxu0 %v586_v46 }
  0x2e   :  { %588 = vmatprep.subr.bf16.mxu0 %v596_v38 }
  0x31   :  { %590 = vmatpush3.bf16.msra.mxu0 %v589_v49 }
  0x34   :  { %508 = vmatmul.mubr.msk.f32.vlgmr.msra.gmra.mrb[2].mxu0 %vm106_vm1, %v26_v50 }
  0x9b   :  { %v326_v7 = vpop.permute.xlu0 %325 }
  0x9c   :  { %v331_v8 = vrot.slane %v326_v7, %v330_v6 }
  0xf7   :  { %v442_v54 = vpop.f32.mrb[0].mxu0 }
  0xf8   :  { %v443_v56 = vpop.f32.mrb[1].mxu0 }
  0xf9   :  { %v477_v57 = vpop.f32.mrb[0].mxu1  ;;  %v444_v58 = vadd.f32 %v443_v56, %v442_v54 }
  0xfa   :  { %v478_v59 = vpop.f32.mrb[1].mxu1 }
  0xfb   :  { %v479_v60 = vadd.f32 %v478_v59, %v477_v57  ;;  %v177_v61 = vadd.f32 %v444_v58, %v408_v55 }
  0xfd   :  { %v247_v62 = vadd.f32 %v479_v60, %v177_v61 }
 0x107   :  { %v316_v63 = vpop.f32.mrb[2].mxu0 }
 0x108   :  { %v317_v0 = vadd.f32 %v316_v63, %v247_v62  ;;  %v509_v1 = vpop.f32.mrb[3].mxu0 }
 0x10a   :  { %v320_v2 = vmax.f32 %v317_v0, 0.0 }
 0x10c   :  { %511 = vmatpush3.xpose.msra.mxu1 %v320_v2 }
 0x10f   :  { %513 = vmatmul.mubr.f32.vlgmr.msra.gmra.mrb[2].mxu1 %v321_v3 }
 0x1e2   :  { %v398_v9 = vpop.f32.mrb[2].mxu1 }
 0x1e3   :  { %v399_v10 = vadd.f32 %v398_v9, %v331_v8  ;;  %v514_v11 = vpop.f32.mrb[3].mxu1 }
 0x1e5   :  { %403 = vst.msk [vmem:[%s878_s5] sm:$0x1] %vm402_vm2, %v399_v10 }

</bundles_post_ra>
